<compile_context>
chip_gen: v7x
topology: tpu7x:2x2x1
jax: 0.10.0
libtpu: 0.0.40
codegen_flags: <defaults>
</compile_context>

<pallas_src>
import functools

import jax
import jax.numpy as jnp
from jax.experimental import pallas as pl
from jax.experimental.pallas import tpu as pltpu


def _round_up(a, b):
    return (a + b - 1) // b * b


def _cdiv(a, b):
    return (a + b - 1) // b


def _vmem_capacity_bytes(default_bytes=64 << 20):
    """Physical VMEM capacity; conservative (v7x-sized) fallback if query fails."""
    try:
        cap = getattr(pltpu.get_tpu_info(), "vmem_capacity_bytes", None)
        if cap:
            return int(cap)
    except Exception:
        pass
    return default_bytes


# -----------------------------------------------------------------------------
# 1. forward() condition assembly
#    out = (biomime_input with opt_params scattered at `indices`) * margin
# -----------------------------------------------------------------------------
def _condition_forward_kernel(idx_ref, x_ref, p_ref, o_ref, *, margin, n_idx, p_tile):
    j = pl.program_id(0)
    x = x_ref[...]
    p = p_ref[...]
    col = j * p_tile + jax.lax.broadcasted_iota(jnp.int32, x.shape, dimension=1)
    out = x
    for k in range(n_idx):                       # n_idx is tiny (6): unrolled selects
        out = jnp.where(col == idx_ref[k], p[:, k:k + 1], out)
    o_ref[...] = out * margin


def condition_forward(biomime_input, opt_params, indices, margin=1.0, *, p_tile=None):
    """biomime_input: [B, P], opt_params: [B, n_idx].

    Returns biomime_input with `indices` replaced by opt_params, times margin
    (the conditions passed to biomime_muap_gen in forward()).
    """
    B, P = biomime_input.shape
    idx = jnp.asarray(indices, dtype=jnp.int32)
    n_idx = int(idx.shape[0])

    if P < 128:
        # Module's real shape is P == 6: a pallas_call here is launch-overhead
        # bound and its store is a masked partial vst.  Let XLA fuse it.
        # TODO(synk): fuse this scatter+scale into the (external) biomime_muap_gen
        # consumer kernel to remove the HBM round trip entirely.
        out = biomime_input.at[:, idx].set(opt_params)
        return out * jnp.asarray(margin, dtype=biomime_input.dtype)

    if p_tile is None:
        p_tile = min(_round_up(P, 128), 512)
    p_tile = _round_up(p_tile, 128)              # lane-dense output blocks

    kernel = functools.partial(
        _condition_forward_kernel, margin=float(margin), n_idx=n_idx, p_tile=p_tile)
    return pl.pallas_call(
        kernel,
        out_shape=jax.ShapeDtypeStruct((B, P), biomime_input.dtype),
        grid_spec=pltpu.PrefetchScalarGridSpec(
            num_scalar_prefetch=1,               # indices -> SMEM
            grid=(_cdiv(P, p_tile),),
            in_specs=[
                pl.BlockSpec((B, p_tile), lambda j, idx_ref: (0, j)),
                pl.BlockSpec((B, n_idx), lambda j, idx_ref: (0, 0)),
            ],
            out_specs=pl.BlockSpec((B, p_tile), lambda j, idx_ref: (0, j)),
        ),
        compiler_params=pltpu.CompilerParams(dimension_semantics=("parallel",)),
    )(idx, biomime_input, opt_params)


# -----------------------------------------------------------------------------
# 2. torch_kurtosis (row-wise excess kurtosis * 0.01), streaming over T
# -----------------------------------------------------------------------------
def _kurtosis_kernel(x_ref, o_ref, s1, s2, s3, s4, *, inv_n, need_mask, n_rem):
    t = pl.program_id(1)
    last_t = pl.num_programs(1) - 1

    @pl.when(t == 0)
    def _():
        s1[...] = jnp.zeros_like(s1)
        s2[...] = jnp.zeros_like(s2)
        s3[...] = jnp.zeros_like(s3)
        s4[...] = jnp.zeros_like(s4)

    def accumulate(xv):
        x2 = xv * xv
        s1[...] += jnp.sum(xv, axis=1, keepdims=True)
        s2[...] += jnp.sum(x2, axis=1, keepdims=True)
        s3[...] += jnp.sum(x2 * xv, axis=1, keepdims=True)
        s4[...] += jnp.sum(x2 * x2, axis=1, keepdims=True)

    if need_mask:
        # Only the final T tile overlaps the ragged tail: interior tiles run
        # mask-free (no per-element iota/compare/select), and the last tile
        # masks with a select so unspecified edge-block contents (possibly NaN)
        # cannot propagate into the accumulators.
        @pl.when(t != last_t)
        def _():
            accumulate(x_ref[...].astype(jnp.float32))

        @pl.when(t == last_t)
        def _():
            xv = x_ref[...].astype(jnp.float32)
            col = jax.lax.broadcasted_iota(jnp.int32, xv.shape, dimension=1)
            accumulate(jnp.where(col < n_rem, xv, 0.0))
    else:
        accumulate(x_ref[...].astype(jnp.float32))

    @pl.when(t == last_t)
    def _():
        mu = s1[...] * inv_n
        e2 = s2[...] * inv_n
        e3 = s3[...] * inv_n
        e4 = s4[...] * inv_n
        mu2 = mu * mu
        m2 = e2 - mu2
        m4 = e4 - 4.0 * mu * e3 + 6.0 * mu2 * e2 - 3.0 * mu2 * mu2
        kurt = m4 / (m2 * m2) - 3.0
        o_ref[...] = kurt * 0.01


def kurtosis(x, *, row_tile=None, t_tile=None, vmem_limit_bytes=None):
    """x: [N, T] -> [N] excess kurtosis per row, scaled by 0.01 (torch_kurtosis)."""
    N, T = x.shape
    elem_bytes = x.dtype.itemsize

    # VMEM budget derived from the queried chip capacity and passed explicitly
    # to the compiler: v5e/v6e (128 MiB physical, 16/32 MiB scoped default) and
    # v7x (64 MiB physical) are all covered without per-gen retuning.
    if vmem_limit_bytes is None:
        vmem_limit_bytes = min(int(_vmem_capacity_bytes() * 0.5), 96 << 20)
    dma_budget = int(vmem_limit_bytes * 0.75)    # input double-buffer budget

    # Row tile ("parallel" axis): keep >= ~4 row blocks when N allows so the
    # grid can actually shard across TensorCores (v7x has 2 per chip).
    if row_tile is None:
        row_tile = min(256, _round_up(_cdiv(N, 4), 8))
    row_tile = max(8, _round_up(row_tile, 8))
    # TODO(synk): for N < 16 rows one v7x TensorCore stays mostly idle; splitting
    # the T axis across cores with a partial-moment combine pass would fix that.

    # Sample tile: lane-aligned, bounded by the input double-buffer budget.
    t_aligned = _round_up(T, 128)
    if t_tile is None:
        max_t = max(128, (dma_budget // (2 * row_tile * elem_bytes)) // 128 * 128)
        t_tile = min(t_aligned, max_t)
    t_tile = _round_up(min(t_tile, t_aligned), 128)

    num_t = _cdiv(T, t_tile)
    need_mask = (T % t_tile) != 0
    n_rem = T - (num_t - 1) * t_tile             # valid columns in the last T tile

    kernel = functools.partial(
        _kurtosis_kernel, inv_n=float(1.0 / T), need_mask=need_mask, n_rem=n_rem)
    out = pl.pallas_call(
        kernel,
        out_shape=jax.ShapeDtypeStruct((N, 1), jnp.float32),
        grid_spec=pltpu.PrefetchScalarGridSpec(
            num_scalar_prefetch=0,
            grid=(_cdiv(N, row_tile), num_t),    # reduction (T) axis is last
            in_specs=[pl.BlockSpec((row_tile, t_tile), lambda i, k: (i, k))],
            out_specs=pl.BlockSpec((row_tile, 1), lambda i, k: (i, 0)),
            scratch_shapes=[pltpu.VMEM((row_tile, 1), jnp.float32)] * 4,
        ),
        compiler_params=pltpu.CompilerParams(
            dimension_semantics=("parallel", "arbitrary"),
            vmem_limit_bytes=int(vmem_limit_bytes)),
    )(x)
    return out[:, 0]


# -----------------------------------------------------------------------------
# Pure-JAX references for correctness checks
# -----------------------------------------------------------------------------
def _condition_forward_ref(biomime_input, opt_params, indices, margin):
    out = biomime_input.at[:, jnp.asarray(indices)].set(opt_params)
    return out * margin


def _kurtosis_ref(x):
    mean = jnp.mean(x, axis=1, keepdims=True)
    diff = x - mean
    m2 = jnp.mean(diff ** 2, axis=1)
    m4 = jnp.mean(diff ** 4, axis=1)
    return (m4 / m2 ** 2 - 3.0) * 0.01


if __name__ == "__main__":
    key = jax.random.PRNGKey(0)
    k1, k2, k3, k4, k5, k6 = jax.random.split(key, 6)

    # --- condition assembly at the module's real shapes (batch of 8, 6 params) ---
    batch, num_params = 8, 6
    indices = [0, 1, 2, 3, 4, 5]
    margin = 0.8
    biomime_input = jax.random.uniform(k1, (batch, num_params), dtype=jnp.float32)
    opt_params = jax.random.uniform(k2, (batch, len(indices)), dtype=jnp.float32)
    conds = jax.block_until_ready(
        condition_forward(biomime_input, opt_params, indices, margin=margin))
    conds_ref = _condition_forward_ref(biomime_input, opt_params, indices, margin)
    assert jnp.allclose(conds, conds_ref, atol=1e-6), "condition_forward (jnp path) mismatch"

    # --- lane-tiled Pallas path, exercised with a wider condition vector ---
    P_big = 256
    idx_big = [3, 17, 64, 130, 200, 255]
    x_big = jax.random.uniform(k3, (batch, P_big), dtype=jnp.float32)
    p_big = jax.random.uniform(k4, (batch, len(idx_big)), dtype=jnp.float32)
    out_big = jax.block_until_ready(
        condition_forward(x_big, p_big, idx_big, margin=margin, p_tile=128))
    out_big_ref = _condition_forward_ref(x_big, p_big, idx_big, margin)
    assert jnp.allclose(out_big, out_big_ref, atol=1e-6), "condition_forward (pallas) mismatch"

    # --- kurtosis (stand-in for torch_kurtosis on source_est) ---
    num_sources, num_samples = 8, 640
    source_est = jax.random.normal(k5, (num_sources, num_samples), dtype=jnp.float32)
    kurt = jax.block_until_ready(kurtosis(source_est))
    kurt_ref = _kurtosis_ref(source_est)
    assert jnp.allclose(kurt, kurt_ref, rtol=1e-3, atol=1e-5), "kurtosis mismatch"

    # Ragged N (not %8) and T (not %128) with forced T-tiling: exercises row/T
    # edge blocks (no host pad), last-tile masking, and streaming accumulation.
    n2, t2 = 12, 1000
    src2 = jax.random.normal(k6, (n2, t2), dtype=jnp.float32)
    kurt2 = jax.block_until_ready(kurtosis(src2, t_tile=256))
    kurt2_ref = _kurtosis_ref(src2)
    assert jnp.allclose(kurt2, kurt2_ref, rtol=2e-3, atol=2e-5), "kurtosis (tiled) mismatch"

    print("KERNEL_OK")
</pallas_src>

<mosaic_0001>
module attributes {stable_mosaic.version = 11 : i64} {
  func.func @_condition_forward_kernel(%arg0: i32, %arg1: memref<6xi32, #tpu.memory_space<smem>>, %arg2: memref<8x128xf32, #tpu.memory_space<vmem>>, %arg3: memref<8x6xf32, #tpu.memory_space<vmem>>, %arg4: memref<8x128xf32, #tpu.memory_space<vmem>>) attributes {dimension_semantics = [#tpu.dimension_semantics<parallel>], iteration_bounds = array<i64: 2>, scalar_prefetch = 1 : i64, scratch_operands = 0 : i64, tpu.core_type = #tpu.core_type<tc>, window_params = [{transform_indices = @transform_0, window_bounds = array<i64: 8, 128>}, {pipeline_mode = #tpu.pipeline_mode<synchronous>, transform_indices = @transform_1, window_bounds = array<i64: 8, 6>}, {transform_indices = @transform_2, window_bounds = array<i64: 8, 128>}]} {
    %c0 = arith.constant 0 : index
    %c0_0 = arith.constant 0 : index
    %0 = vector.load %arg2[%c0, %c0_0] : memref<8x128xf32, #tpu.memory_space<vmem>>, vector<8x128xf32>
    %c0_1 = arith.constant 0 : index
    %c0_2 = arith.constant 0 : index
    %1 = vector.load %arg3[%c0_1, %c0_2] : memref<8x6xf32, #tpu.memory_space<vmem>>, vector<8x6xf32>
    %c128_i32 = arith.constant 128 : i32
    %2 = arith.muli %arg0, %c128_i32 : i32
    %3 = tpu.iota {dimensions = array<i32: 1>} : vector<8x128xi32>
    %4 = vector.broadcast %2 : i32 to vector<8x128xi32>
    %5 = arith.addi %4, %3 : vector<8x128xi32>
    %c0_3 = arith.constant 0 : index
    %6 = memref.load %arg1[%c0_3] : memref<6xi32, #tpu.memory_space<smem>>
    %7 = vector.broadcast %6 : i32 to vector<8x128xi32>
    %8 = arith.cmpi eq, %5, %7 : vector<8x128xi32>
    %9 = vector.extract_strided_slice %1 {offsets = [0, 0], sizes = [8, 1], strides = [1, 1]} : vector<8x6xf32> to vector<8x1xf32>
    %10 = vector.shape_cast %9 : vector<8x1xf32> to vector<8x1xf32>
    %11 = vector.broadcast %10 : vector<8x1xf32> to vector<8x128xf32>
    %12 = arith.select %8, %11, %0 : vector<8x128xi1>, vector<8x128xf32>
    %c1 = arith.constant 1 : index
    %13 = memref.load %arg1[%c1] : memref<6xi32, #tpu.memory_space<smem>>
    %14 = vector.broadcast %13 : i32 to vector<8x128xi32>
    %15 = arith.cmpi eq, %5, %14 : vector<8x128xi32>
    %16 = vector.extract_strided_slice %1 {offsets = [0, 1], sizes = [8, 1], strides = [1, 1]} : vector<8x6xf32> to vector<8x1xf32>
    %17 = vector.shape_cast %16 : vector<8x1xf32> to vector<8x1xf32>
    %18 = vector.broadcast %17 : vector<8x1xf32> to vector<8x128xf32>
    %19 = arith.select %15, %18, %12 : vector<8x128xi1>, vector<8x128xf32>
    %c2 = arith.constant 2 : index
    %20 = memref.load %arg1[%c2] : memref<6xi32, #tpu.memory_space<smem>>
    %21 = vector.broadcast %20 : i32 to vector<8x128xi32>
    %22 = arith.cmpi eq, %5, %21 : vector<8x128xi32>
    %23 = vector.extract_strided_slice %1 {offsets = [0, 2], sizes = [8, 1], strides = [1, 1]} : vector<8x6xf32> to vector<8x1xf32>
    %24 = vector.shape_cast %23 : vector<8x1xf32> to vector<8x1xf32>
    %25 = vector.broadcast %24 : vector<8x1xf32> to vector<8x128xf32>
    %26 = arith.select %22, %25, %19 : vector<8x128xi1>, vector<8x128xf32>
    %c3 = arith.constant 3 : index
    %27 = memref.load %arg1[%c3] : memref<6xi32, #tpu.memory_space<smem>>
    %28 = vector.broadcast %27 : i32 to vector<8x128xi32>
    %29 = arith.cmpi eq, %5, %28 : vector<8x128xi32>
    %30 = vector.extract_strided_slice %1 {offsets = [0, 3], sizes = [8, 1], strides = [1, 1]} : vector<8x6xf32> to vector<8x1xf32>
    %31 = vector.shape_cast %30 : vector<8x1xf32> to vector<8x1xf32>
    %32 = vector.broadcast %31 : vector<8x1xf32> to vector<8x128xf32>
    %33 = arith.select %29, %32, %26 : vector<8x128xi1>, vector<8x128xf32>
    %c4 = arith.constant 4 : index
    %34 = memref.load %arg1[%c4] : memref<6xi32, #tpu.memory_space<smem>>
    %35 = vector.broadcast %34 : i32 to vector<8x128xi32>
    %36 = arith.cmpi eq, %5, %35 : vector<8x128xi32>
    %37 = vector.extract_strided_slice %1 {offsets = [0, 4], sizes = [8, 1], strides = [1, 1]} : vector<8x6xf32> to vector<8x1xf32>
    %38 = vector.shape_cast %37 : vector<8x1xf32> to vector<8x1xf32>
    %39 = vector.broadcast %38 : vector<8x1xf32> to vector<8x128xf32>
    %40 = arith.select %36, %39, %33 : vector<8x128xi1>, vector<8x128xf32>
    %c5 = arith.constant 5 : index
    %41 = memref.load %arg1[%c5] : memref<6xi32, #tpu.memory_space<smem>>
    %42 = vector.broadcast %41 : i32 to vector<8x128xi32>
    %43 = arith.cmpi eq, %5, %42 : vector<8x128xi32>
    %44 = vector.extract_strided_slice %1 {offsets = [0, 5], sizes = [8, 1], strides = [1, 1]} : vector<8x6xf32> to vector<8x1xf32>
    %45 = vector.shape_cast %44 : vector<8x1xf32> to vector<8x1xf32>
    %46 = vector.broadcast %45 : vector<8x1xf32> to vector<8x128xf32>
    %47 = arith.select %43, %46, %40 : vector<8x128xi1>, vector<8x128xf32>
    %cst = arith.constant 8.000000e-01 : f32
    %48 = vector.broadcast %cst : f32 to vector<8x128xf32>
    %49 = arith.mulf %47, %48 : vector<8x128xf32>
    %c0_4 = arith.constant 0 : index
    %c0_5 = arith.constant 0 : index
    %50 = vector.load %arg4[%c0_4, %c0_5] : memref<8x128xf32, #tpu.memory_space<vmem>>, vector<8x128xf32>
    tpu.vector_store %arg4[%c0_4, %c0_5], %49 {strides = array<i32>} : memref<8x128xf32, #tpu.memory_space<vmem>>, vector<8x128xf32>,
    return
  }
  func.func @transform_0(%arg0: i32, %arg1: memref<6xi32, #tpu.memory_space<smem>>) -> (i32, i32) {
    %c0_i32 = arith.constant 0 : i32
    %c0_i32_0 = arith.constant 0 : i32
    return %c0_i32, %arg0 : i32, i32
  }
  func.func @transform_1(%arg0: i32, %arg1: memref<6xi32, #tpu.memory_space<smem>>) -> (i32, i32) {
    %c0_i32 = arith.constant 0 : i32
    %c0_i32_0 = arith.constant 0 : i32
    %c0_i32_1 = arith.constant 0 : i32
    return %c0_i32, %c0_i32_0 : i32, i32
  }
  func.func @transform_2(%arg0: i32, %arg1: memref<6xi32, #tpu.memory_space<smem>>) -> (i32, i32) {
    %c0_i32 = arith.constant 0 : i32
    %c0_i32_0 = arith.constant 0 : i32
    return %c0_i32, %arg0 : i32, i32
  }
}

</mosaic_0001>

<bundles_post_ra>
// kernel: tpu_custom_call.1
= control target key start
LH: loop header
LB: loop body
LE: loop exit
PB: predicated region body
PF: predicated region fallthrough
CT: control target
= control target key end

     0   :  { %s815_s0 = inlined_call_operand.hbm [shape: s32[6], index: 0, kind: input, shape index: {}]   ;;  %s816_s1 = inlined_call_operand.hbm [shape: f32[8,256], index: 1, kind: input, shape index: {}]   ;;  %s817_s2 = inlined_call_operand.hbm [shape: f32[8,6], index: 2, kind: input, shape index: {}]   ;;  %s818_s3 = inlined_call_operand.hbm [shape: f32[8,256], index: 3, kind: output, shape index: {}]  }
   0x1   :  { %s419_s14 = scalar_lea.hbm %s815_s0, 16 }
   0x2   :  { %p420_p0 = scmp.ne.s32.totalorder %s815_s0, %s419_s14  ;;  %p423_p1 = scmp.lt.u32.totalorder %s419_s14, %s815_s0 }
   0x4   :  { %p425_p2 = pnand %p423_p1, %p420_p0 }
   0x6   :  { %428 = shalt.err (!%p425_p2)  }
   0x7   :  { %s561_s19 = smov [#allocation3]  }
   0x8   :  { %9 = dma.hbm_to_smem %s815_s0, 16, %s561_s19, [#allocation2] }
   0x9   :  { %531 = dma.done.wait [#allocation2], 16 }
   0xa   :  { %532 = vsyncadd [#allocation2], 4294967280 }
   0xb   :  { %11 = sfence }
   0xc   :  { %12 = vsyncpa [#allocation5], 0 }
   0xd   :  { %14 = vsyncpa [#allocation5 + $0x1], 0 }
   0xe   :  { %15 = vsyncpa [#allocation8], 0 }
   0xf   :  { %16 = vsyncpa [#allocation6], 0 }
  0x10   :  { %18 = vsyncpa [#allocation6 + $0x1], 0  ;;  %s603_s22 = smov 0   ;;  %s605_s23 = smov 0  }
  0x11   :  { %s607_s24 = smov 0   ;;  %s609_s25 = smov 0  }
  0x12 LB: > { %s624_s0 = sadd.s32 4294967295, %s559_s25   ;;  %s329_s26 = sadd.s32 4294967294, %s559_s25   ;;  %s559_s25 = sphi %s609_s25, %s842_s25   ;;  %s555_s24 = sphi %s607_s24, %s841_s24   ;;  %s551_s23 = sphi %s605_s23, %s840_s23   ;;  %s547_s22 = sphi %s603_s22, %s839_s22  }
  0x13   : > { %p44_p3 = scmp.ne.s32.totalorder %s551_s23, %s547_s22  ;;  %p819_p4 = scmp.eq.s32.totalorder %s624_s0, 0 }
  0x14   : > { %p95_p6 = scmp.eq.s32.totalorder %s329_s26, 1  ;;  %p330_p8 = scmp.ge.s32.totalorder %s559_s25, 1 }
  0x15   : > { %p633_p7 = por %p819_p4, %p44_p3  ;;  %p102_p10 = scmp.lt.s32.totalorder %s559_s25, 3 }
  0x16   : > { %p638_p9 = por %p95_p6, %p44_p3  ;;  %s562_s30 = smov [#allocation7]  }
  0x17   : > { %s822_s27 = scalar_select %p633_p7, 1, 0 }
  0x18   : > { %s823_s28 = scalar_select %p638_p9, 1, 0 }
  0x19   : > { %p643_p11 = pnand %p330_p8, %p102_p10  ;;  %s115_s4 = sshll.u32 %s562_s30, 4  ;;  %s116_s4 = int_to_ptr.vmem [resolvable:$true] %s115_s4 }
  0x1a   : > { %s651_s5 = sadd.s32 1, %s559_s25   ;;  %s31_s9 = sadd.s32 1, %s555_s24 }
  0x1b   : > { %s824_s29 = scalar_select %p643_p11, 1, 0 }
  0x1c   : > { %p357_p13 = pneg %p643_p11  ;;  %s28_s7 = ssub.s32 %s559_s25, %s651_s5 }
  0x1d   : > { %p661_p1 = scmp.eq.s32.totalorder %s28_s7, 0  ;;  %s429_s12 = scalar_lea.hbm %s817_s2, 128 }
  0x1e   : > { %p655_p0 = pnand %p357_p13, %p819_p4  ;;  %p430_p3 = scmp.ne.s32.totalorder %s817_s2, %s429_s12 }
  0x1f   : > { %s826_s8 = scalar_select %p661_p1, 1, 0 }
  0x20   : > { %p431_p6 = pneg %p655_p0  ;;  %p436_p13 = scmp.lt.u32.totalorder %s429_s12, %s817_s2 }
  0x22   : > { %p432_p8 = pnand %p431_p6, %p430_p3 }
  0x24   : > { %p433_p10 = pneg %p432_p8 }
  0x26   : > { %p438_p12 = pnand %p436_p13, %p433_p10 }
  0x28   : > { %441 = shalt.err (!%p438_p12)
}
  0x29   : > { %s442_s17 = scalar_lea.vmem %s116_s4, 128  ;;  %p450_p9 = scmp.lt.s32.totalorder %s116_s4, %s116_s4 }
  0x2a   : > { %p443_p4 = scmp.ne.s32.totalorder %s116_s4, %s442_s17  ;;  %p451_p7 = scmp.lt.s32.totalorder %s442_s17, %s442_s17 }
  0x2c   : > { %p445_p5 = pnand %p443_p4, %p431_p6  ;;  %p452_p11 = por %p451_p7, %p450_p9 }
  0x2e   : > { %p446_p2 = pneg %p445_p5 }
  0x30   : > { %p453_p1 = pnand %p452_p11, %p446_p2 }
  0x32   : > { %456 = shalt.err (!%p453_p1)
}
  0x33   : > { %360 = dma.hbm_to_vmem [thread:$0]  (!%p655_p0), %s817_s2, 128, %s116_s4, [#allocation8]  }
  0x34   : > { %p827_p4 = scmp.ne.s32.totalorder %s826_s8, 0  ;;  %p39_p5 = scmp.eq.s32.totalorder %s559_s25, 0 }
  0x35   : > { %p828_p7 = scmp.ne.s32.totalorder %s555_s24, %s551_s23  ;;  %p829_p9 = scmp.eq.s32.totalorder %s624_s0, 1 }
  0x36   : > { %s687_s20 = scalar_select %p827_p4, %s555_s24, %s31_s9  }
  0x37   : > { %p695_p11 = por %p829_p9, %p828_p7  ;;  %p370_p12 = scmp.lt.s32.totalorder %s559_s25, 2 }
  0x38   : > { %s126_s26 = sand.u32 1, %s555_s24   ;;  %p831_p1 = pmov %p828_p7 }
  0x39   : > { %s333_s30 = sshll.u32 %s126_s26, 3  ;;  %s334_s6 = sshll.u32 %s559_s25, 7 }
  0x3a   : > { %p40_p2 = por %p39_p5, %p831_p1  ;;  %s708_s4 = scalar_lea.hbm %s816_s1, %s334_s6 }
  0x3b   : > { %s130_s8 = scalar_lea.vmem [#allocation4], %s333_s30  ;;  %s127_s12 = scalar_lea.sflag [#allocation5], %s126_s26 }
  0x3c   : > { %s137_s9 = sshll.u32 %s130_s8, 4  ;;  %p710_p0 = pnand %p370_p12, %p40_p2  ;;  %s714_s9 = int_to_ptr.vmem [resolvable:$true] %s137_s9 }
  0x3d   : > { %s457_s13 = scalar_lea.hbm %s708_s4, 128  ;;  %s462_s16 = scalar_lea.hbm %s816_s1, 256 }
  0x3e   : > { %p458_p3 = scmp.ne.s32.totalorder %s708_s4, %s457_s13  ;;  %p459_p6 = pneg %p710_p0 }
  0x3f   : > { %p463_p13 = scmp.lt.u32.totalorder %s708_s4, %s816_s1  ;;  %p464_p4 = scmp.lt.u32.totalorder %s462_s16, %s457_s13 }
  0x40   : > { %p460_p8 = pnand %p459_p6, %p458_p3  ;;  %p466_p7 = scmp.lt.u32.totalorder %s457_s13, %s708_s4 }
  0x41   : > { %p465_p5 = por %p464_p4, %p463_p13 }
  0x42   : > { %p461_p10 = pneg %p460_p8 }
  0x43   : > { %p467_p9 = por %p466_p7, %p465_p5 }
  0x45   : > { %p468_p12 = pnand %p467_p9, %p461_p10 }
  0x47   : > { %471 = shalt.err (!%p468_p12)
}
  0x48   : > { %s472_s19 = scalar_lea.vmem %s714_s9, 128  ;;  %s563_s26 = smov [#allocation4]  }
  0x49   : > { %p473_p1 = scmp.ne.s32.totalorder %s714_s9, %s472_s19  ;;  %s477_s30 = sshll.u32 %s563_s26, 4  ;;  %s478_s30 = int_to_ptr.vmem [resolvable:$false] %s477_s30 }
  0x4a   : > { %s479_s6 = scalar_lea.vmem %s478_s30, 256  ;;  %p480_p8 = scmp.lt.s32.totalorder %s714_s9, %s478_s30 }
  0x4b   : > { %p475_p2 = pnand %p473_p1, %p459_p6  ;;  %p481_p13 = scmp.lt.s32.totalorder %s479_s6, %s472_s19 }
  0x4d   : > { %p476_p3 = pneg %p475_p2  ;;  %p482_p4 = por %p481_p13, %p480_p8 }
  0x4f   : > { %p483_p5 = pnand %p482_p4, %p476_p3 }
  0x51   : > { %486 = shalt.err (!%p483_p5)
}
  0x52   : > { %364 = dma.hbm_to_vmem [thread:$0]  (!%p710_p0), %s708_s4, 128, %s714_s9, %s127_s12  }
  0x53   : > { %p833_p10 = scmp.ne.s32.totalorder %s824_s29, 0 }
  0x54   : > { %s744_s7 = sand.u32 (!%p833_p10), 1, %s551_s23   ;;  %p834_p6 = scmp.ne.s32.totalorder (!%p833_p10), %s822_s27, 0 }
  0x55   : > { %146 = sbr.rel (%p833_p10) target bundleno = 254 (0xfe), region = 28  ;;  %s336_s10 = sshll.u32 (!%p833_p10), %s744_s7, 3 }
  0x56   : > { %s149_s8 = scalar_lea.sflag (!%p833_p10), [#allocation5], %s744_s7  ;;  %s750_s13 = scalar_lea.vmem (!%p833_p10), [#allocation4], %s336_s10 }
  0x5c   : > { %534 = dma.done.wait (%p834_p6), %s149_s8, 128  }
  0x5d   : > { %536 = vsyncadd (%p834_p6), %s149_s8, 4294967168  ;;  %p835_p0 = scmp.eq.s32.totalorder %s624_s0, 0 }
  0x5f   : > { %538 = dma.done.wait (%p835_p0), [#allocation8], 128   ;;  %p836_p7 = pmov %p835_p0 }
  0x60   : > { %v564_v0 = vmov 2   ;;  %v565_v1 = vmov 0   ;;  %v178_v2 = vld [vmem:[#allocation7] sm:$0xff]  ;;  %v566_v3 = vmov 3   ;;  %v567_v4 = vmov 1   ;;  %s184_s27 = sld [smem:[#allocation3]] }
  0x61   : > { %540 = vsyncadd (%p836_p7), [#allocation8], 4294967168  ;;  %415 = vset.pattern.permute.xlu1 %v564_v0  ;;  %413 = vset.pattern.permute.xlu0 %v565_v1  ;;  %v568_v5 = vmov 4   ;;  %v569_v6 = vmov 5   ;;  %v180_v7 = vlaneseq  ;;  %s339_s29 = sshll.u32 %s624_s0, 7  ;;  %s340_s4 = sld [smem:[#allocation3 + $0x1]] }
  0x62   : > { %205 = vperm.xlu1 %415, %v178_v2   ;;  %189 = vperm.xlu0 %413, %v178_v2   ;;  %s341_s9 = sld [smem:[#allocation3 + $0x2]]  ;;  %v182_v9 = vstv %s339_s29  ;;  %s342_s11 = sld [smem:[#allocation3 + $0x3]]  ;;  %v177_v16 = vld [vmem:[%s750_s13] sm:$0xff] }
  0x63   : > { %v181_v8 = vand.u32 127, %v180_v7  ;;  %s343_s12 = sld [smem:[#allocation3 + $0x4]]  ;;  %s344_s14 = sld [smem:[#allocation3 + $0x5]] }
  0x64   : > { %s176_s15 = scalar_lea.vmem [#allocation9], %s336_s10  ;;  %s771_s19 = scalar_lea.hbm %s818_s3, %s339_s29 }
  0x65   : > { %v183_v10 = vadd.s32 %v182_v9, %v181_v8  ;;  %s249_s16 = sshll.u32 %s176_s15, 4  ;;  %s236_s26 = scalar_lea.sflag [#allocation6], %s744_s7  ;;  %s773_s16 = int_to_ptr.vmem [resolvable:$true] %s249_s16 }
  0x66   : > { %416 = vset.pattern.permute.xlu1 %v566_v3  ;;  %414 = vset.pattern.permute.xlu0 %v567_v4  ;;  %v185_v11 = vstv %s184_s27  ;;  %s487_s30 = scalar_lea.vmem %s773_s16, 128  ;;  %s570_s6 = smov [#allocation9]  }
  0x67   : > { %213 = vperm.xlu1 %416, %v178_v2   ;;  %197 = vperm.xlu0 %414, %v178_v2   ;;  %v194_v14 = vstv %s340_s4  ;;  %vm186_vm0 = vcmp.eq.s32.totalorder %v183_v10, %v185_v11  ;;  %p488_p9 = scmp.ne.s32.totalorder %s773_s16, %s487_s30  ;;  %s491_s10 = sshll.u32 %s570_s6, 4  ;;  %s492_s10 = int_to_ptr.vmem [resolvable:$false] %s491_s10 }
  0x68   : > { %v202_v15 = vstv %s341_s9  ;;  %vm195_vm1 = vcmp.eq.s32.totalorder %v183_v10, %v194_v14  ;;  %v210_v17 = vstv %s342_s11  ;;  %s493_s0 = scalar_lea.vmem %s492_s10, 256  ;;  %p494_p2 = scmp.lt.s32.totalorder %s773_s16, %s492_s10 }
  0x69   : > { %vm203_vm2 = vcmp.eq.s32.totalorder %v183_v10, %v202_v15  ;;  %v218_v21 = vstv %s343_s12  ;;  %v226_v23 = vstv %s344_s14  ;;  %vm211_vm3 = vcmp.eq.s32.totalorder %v183_v10, %v210_v17  ;;  %p489_p12 = pnand %p488_p9, %p695_p11  ;;  %p495_p3 = scmp.lt.s32.totalorder %s493_s0, %s487_s30 }
  0x6a   : > { %vm219_vm4 = vcmp.eq.s32.totalorder %v183_v10, %v218_v21  ;;  %vm227_vm5 = vcmp.eq.s32.totalorder %v183_v10, %v226_v23 }
  0x6b   : > { %417 = vset.pattern.permute.xlu1 %v568_v5  ;;  %418 = vset.pattern.permute.xlu0 %v569_v6  ;;  %p490_p1 = pneg %p489_p12  ;;  %p496_p8 = por %p495_p3, %p494_p2 }
  0x6c   : > { %221 = vperm.xlu1 %417, %v178_v2   ;;  %229 = vperm.xlu0 %418, %v178_v2  }
  0x6d   : > { %p497_p13 = pnand %p496_p8, %p490_p1 }
  0xe1   : > { %v206_v12 = vpop.permute.xlu1 %205  ;;  %v190_v13 = vpop.permute.xlu0 %189 }
  0xe2   : > { %v192_v18 = vsel %vm186_vm0, %v190_v13, %v177_v16 }
  0xe6   : > { %v214_v19 = vpop.permute.xlu1 %213  ;;  %v198_v20 = vpop.permute.xlu0 %197 }
  0xe7   : > { %v200_v22 = vsel %vm195_vm1, %v198_v20, %v192_v18 }
  0xe8   : > { %v208_v24 = vsel %vm203_vm2, %v206_v12, %v200_v22 }
  0xe9   : > { %v216_v26 = vsel %vm211_vm3, %v214_v19, %v208_v24 }
  0xeb   : > { %v222_v25 = vpop.permute.xlu1 %221  ;;  %v230_v27 = vpop.permute.xlu0 %229 }
  0xec   : > { %v224_v28 = vsel %vm219_vm4, %v222_v25, %v216_v26 }
  0xed   : > { %v232_v29 = vsel %vm227_vm5, %v230_v27, %v224_v28 }
  0xee   : > { %v233_v30 = vmul.f32 0.8, %v232_v29 }
  0xf0   : > { %234 = vst [vmem:[%s176_s15] sm:$0xff] %v233_v30 }
  0xf1   : > { %500 = shalt.err (!%p497_p13)
}
  0xf2   : > { %s501_s7 = scalar_lea.hbm %s771_s19, 128  ;;  %s505_s27 = scalar_lea.hbm %s818_s3, 256 }
  0xf3   : > { %p502_p4 = scmp.ne.s32.totalorder %s771_s19, %s501_s7  ;;  %p506_p6 = scmp.lt.u32.totalorder %s771_s19, %s818_s3 }
  0xf4   : > { %p507_p0 = scmp.lt.u32.totalorder %s505_s27, %s501_s7  ;;  %p509_p9 = scmp.lt.u32.totalorder %s501_s7, %s771_s19 }
  0xf5   : > { %p503_p5 = pnand %p502_p4, %p695_p11 }
  0xf6   : > { %p508_p7 = por %p507_p0, %p506_p6 }
  0xf7   : > { %p504_p10 = pneg %p503_p5 }
  0xf8   : > { %p510_p12 = por %p509_p9, %p508_p7 }
  0xfa   : > { %p511_p1 = pnand %p510_p12, %p504_p10 }
  0xfc   : > { %514 = shalt.err (!%p511_p1)
}
  0xfd   : > { %355 = dma.vmem_to_hbm [thread:$0]  (%p695_p11), %s773_s16, 128, %s771_s19, %s236_s26  }
  0xfe PF: > { %s261_s9 = sand.u32 1, %s547_s22   ;;  %p837_p2 = scmp.ne.s32.totalorder %s823_s28, 0 }
  0xff   : > { %p838_p3 = scmp.ge.s32.totalorder %s559_s25, 2  ;;  %s262_s11 = scalar_lea.sflag [#allocation6], %s261_s9 }
 0x101   : > { %p366_p8 = pnand %p838_p3, %p837_p2 }
 0x103   : > { %542 = dma.done.wait (!%p366_p8), %s262_s11, 128  }
 0x104   : > { %544 = vsyncadd (!%p366_p8), %s262_s11, 4294967168  ;;  %p21_p13 = scmp.ge.s32.totalorder %s651_s5, 4   ;;  %s839_s22 = smov %s551_s23 }
 0x105   : > { %s840_s23 = smov %s555_s24  ;;  %s841_s24 = smov %s687_s20 }
 0x106   : > { %s842_s25 = smov %s651_s5  ;;  %23 = sbr.rel (!%p21_p13) target bundleno = 18 (0x12), region = 77 }
 0x10d   :  { %267 = vsyncpa [#allocation5], 1 }
 0x10e   :  { %269 = vsyncpa [#allocation5 + $0x1], 1 }
 0x10f   :  { %270 = vsyncpa [#allocation8], 1 }
 0x110   :  { %271 = vsyncpa [#allocation6], 1 }
 0x111   :  { %273 = vsyncpa [#allocation6 + $0x1], 1 }

</bundles_post_ra>
